<compile_context>
chip_gen: v6e
topology: v6e:2x2x1
jax: 0.10.0
libtpu: 0.0.40
codegen_flags: <defaults>
</compile_context>

<pallas_src>
import itertools

import numpy as np
import jax
import jax.numpy as jnp
from jax.experimental import pallas as pl
from jax.experimental.pallas import tpu as pltpu

_MAX_TILE_N = 256    # pred-axis tile (sublane axis); multiple of 8, keeps vregs bounded
_MAX_TILE_M = 1024   # target-axis tile (lane axis);  multiple of 128 (lane-dense stores)


def _round_up(x, m):
    return ((x + m - 1) // m) * m


# ----------------------------------------------------------------------------- kernels

def _l1_cost_kernel(pred_ref, tgt_ref, cost_ref):
    """Pairwise L1 (cdist p=1) over the 4 box coordinates.

    pred_ref: (tile_n, 4)   prediction boxes (rows / sublanes)
    tgt_ref : (4, tile_m)   target boxes, transposed (columns / lanes)
    cost_ref: (tile_n, tile_m)  -- the only output (matcher discards everything else)
    """
    pcx = pred_ref[:, 0:1]
    pcy = pred_ref[:, 1:2]
    pw = pred_ref[:, 2:3]
    ph = pred_ref[:, 3:4]
    tcx = tgt_ref[0:1, :]
    tcy = tgt_ref[1:2, :]
    tw = tgt_ref[2:3, :]
    th = tgt_ref[3:4, :]
    cost_ref[...] = (jnp.abs(pcx - tcx) + jnp.abs(pcy - tcy)
                     + jnp.abs(pw - tw) + jnp.abs(ph - th))


def _matched_l1_kernel(pred_ref, tgt_ref, out_ref):
    """Elementwise matched-pair L1, reduced in-kernel to a single scalar sum.

    Padded rows are zero in both inputs and therefore contribute nothing."""
    d = jnp.abs(pred_ref[...] - tgt_ref[...])            # (n_pad, 4)
    row = jnp.sum(d, axis=1, keepdims=True)              # (n_pad, 1)  lane reduce
    out_ref[...] = jnp.sum(row, axis=0, keepdims=True)   # (1, 1)      sublane reduce


# ----------------------------------------------------------------------------- wrappers

@jax.jit
def pairwise_l1_cost_padded(pred, tgt):
    """pred (N,4), tgt (M,4) -> padded (N_pad, M_pad) f32 L1 cost matrix.

    Caller slices the valid [:N, :M] region (padding rows/cols are vs. zero boxes)."""
    N, D = pred.shape
    M = tgt.shape[0]
    tile_n = min(_MAX_TILE_N, _round_up(max(N, 1), 8))
    tile_m = min(_MAX_TILE_M, _round_up(max(M, 1), 128))
    n_pad = _round_up(max(N, 1), tile_n)
    m_pad = _round_up(max(M, 1), tile_m)

    pred_p = jnp.pad(pred.astype(jnp.float32), ((0, n_pad - N), (0, 0)))
    tgt_t = jnp.pad(jnp.transpose(tgt.astype(jnp.float32)), ((0, 0), (0, m_pad - M)))

    return pl.pallas_call(
        _l1_cost_kernel,
        grid=(n_pad // tile_n, m_pad // tile_m),
        in_specs=[pl.BlockSpec((tile_n, D), lambda i, j: (i, 0)),
                  pl.BlockSpec((D, tile_m), lambda i, j: (0, j))],
        out_specs=pl.BlockSpec((tile_n, tile_m), lambda i, j: (i, j)),
        out_shape=jax.ShapeDtypeStruct((n_pad, m_pad), jnp.float32),
        compiler_params=pltpu.CompilerParams(
            dimension_semantics=("parallel", "parallel"),
            vmem_limit_bytes=64 * 1024 * 1024),
    )(pred_p, tgt_t)


@jax.jit
def matched_l1_sum(pred_boxes, tgt_boxes):
    """Sum_{matched pairs} |pred - tgt| over all 4 coordinates (f32 scalar)."""
    N, D = pred_boxes.shape
    n_pad = _round_up(max(N, 1), 8)
    pred_p = jnp.pad(pred_boxes.astype(jnp.float32), ((0, n_pad - N), (0, 0)))
    tgt_p = jnp.pad(tgt_boxes.astype(jnp.float32), ((0, n_pad - N), (0, 0)))
    s = pl.pallas_call(
        _matched_l1_kernel,
        grid=(1,),
        in_specs=[pl.BlockSpec((n_pad, D), lambda i: (0, 0)),
                  pl.BlockSpec((n_pad, D), lambda i: (0, 0))],
        out_specs=pl.BlockSpec((1, 1), lambda i: (0, 0)),
        out_shape=jax.ShapeDtypeStruct((1, 1), jnp.float32),
    )(pred_p, tgt_p)
    return s[0, 0]


# ----------------------------------------------------------------------------- host glue

def _hungarian_square(cost):
    """O(n^3) Hungarian (potentials / Jonker-Volgenant style) on a square cost matrix.

    Returns row_for_col[j] = 0-indexed row assigned to column j."""
    cost = np.asarray(cost, dtype=np.float64)
    n = cost.shape[0]
    INF = np.inf
    u = np.zeros(n + 1)
    v = np.zeros(n + 1)
    p = np.zeros(n + 1, dtype=np.int64)     # p[j]: 1-indexed row matched to column j
    way = np.zeros(n + 1, dtype=np.int64)
    for i in range(1, n + 1):
        p[0] = i
        j0 = 0
        minv = np.full(n + 1, INF)
        used = np.zeros(n + 1, dtype=bool)
        while True:
            used[j0] = True
            i0 = p[j0]
            cur = cost[i0 - 1, :] - u[i0] - v[1:]
            free = ~used[1:]
            better = free & (cur < minv[1:])
            minv[1:][better] = cur[better]
            way[1:][better] = j0
            masked = np.where(free, minv[1:], INF)
            j1 = int(np.argmin(masked)) + 1
            delta = masked[j1 - 1]
            u[p[used]] += delta
            v[used] -= delta
            minv[~used] -= delta
            j0 = j1
            if p[j0] == 0:
                break
        while j0 != 0:
            j1 = int(way[j0])
            p[j0] = p[j1]
            j0 = j1
    return p[1:] - 1


def _linear_sum_assignment(cost):
    """Exact min-cost assignment, equivalent to scipy.optimize.linear_sum_assignment.

    TODO(synk): the Hungarian algorithm is a sequential combinatorial routine with no
    clean Pallas equivalent; it runs on host in numpy (O(n^3), vectorized inner loops)."""
    cost = np.asarray(cost, dtype=np.float64)
    R, C = cost.shape
    if R == 0 or C == 0:
        return np.zeros((0,), np.int64), np.zeros((0,), np.int64)
    transposed = False
    if R < C:
        cost = cost.T
        R, C = C, R
        transposed = True
    square = np.zeros((R, R), dtype=np.float64)
    square[:, :C] = cost                      # dummy columns: constant cost per column
    row_for_col = _hungarian_square(square)
    rows = row_for_col[:C].astype(np.int64)
    cols = np.arange(C, dtype=np.int64)
    if transposed:
        rows, cols = cols, rows
    order = np.argsort(rows, kind="stable")
    return rows[order], cols[order]


def detr_loc_loss(preds, targets_list):
    """DetrLocLoss.forward: L1-cost Hungarian matching, then matched L1 / num_targets."""
    B, Q, D = preds.shape
    pred_flat = preds.reshape(B * Q, D)
    sizes = [int(np.asarray(t).shape[0]) for t in targets_list]
    gt_all = np.concatenate([np.asarray(t, np.float32).reshape(-1, D)
                             for t in targets_list], axis=0)
    M = gt_all.shape[0]

    # Pairwise matcher cost on device (single-output, tiled, lane-dense), then ONE
    # device->host copy of the cost matrix for the assignment.
    cost_padded = pairwise_l1_cost_padded(pred_flat, jnp.asarray(gt_all))
    cost_np = np.asarray(jax.device_get(cost_padded))[:B * Q, :M].reshape(B, Q, M)

    # Per-image assignment on host (matches reference: per-image column slice).
    indices = []
    start = 0
    for b, n in enumerate(sizes):
        indices.append(_linear_sum_assignment(cost_np[b][:, start:start + n]))
        start += n

    batch_idx = np.concatenate([np.full_like(src, b) for b, (src, _) in enumerate(indices)])
    pred_idx = np.concatenate([src for src, _ in indices])
    tgt_boxes = np.concatenate(
        [np.asarray(targets_list[b], np.float32).reshape(-1, D)[j]
         for b, (_, j) in enumerate(indices)], axis=0)

    matched_pred = preds[jnp.asarray(batch_idx, jnp.int32),
                         jnp.asarray(pred_idx, jnp.int32)]          # (num_matched, 4)

    num_boxes = tgt_boxes.shape[0]
    loss_sum = matched_l1_sum(matched_pred, jnp.asarray(tgt_boxes))
    return loss_sum / num_boxes


# ----------------------------------------------------------------------------- reference

def _reference_loss(preds_np, targets_list):
    """Pure-numpy reference with exact brute-force assignment (toy sizes only)."""
    B, Q, D = preds_np.shape
    gt = np.concatenate([np.asarray(t, np.float64).reshape(-1, D) for t in targets_list], 0)
    cost = np.abs(preds_np.reshape(B * Q, 1, D).astype(np.float64)
                  - gt[None]).sum(-1).reshape(B, Q, -1)
    sizes = [len(t) for t in targets_list]
    total, count, start = 0.0, 0, 0
    for b, n in enumerate(sizes):
        c = cost[b][:, start:start + n]
        best, best_rows = np.inf, None
        for perm in itertools.permutations(range(Q), n):
            s = sum(c[perm[j], j] for j in range(n))
            if s < best:
                best, best_rows = s, perm
        rows = np.asarray(best_rows)
        total += np.abs(preds_np[b, rows].astype(np.float64)
                        - np.asarray(targets_list[b], np.float64)).sum()
        count += n
        start += n
    return total / count


# ----------------------------------------------------------------------------- main

if __name__ == "__main__":
    key = jax.random.PRNGKey(0)
    B, Q, D = 2, 8, 4
    k1, k2, k3 = jax.random.split(key, 3)

    centers = jax.random.uniform(k1, (B, Q, 2), minval=0.2, maxval=0.8)
    whs = jax.random.uniform(k2, (B, Q, 2), minval=0.05, maxval=0.3)
    preds = jnp.concatenate([centers, whs], axis=-1).astype(jnp.float32)

    sizes = [3, 2]
    targets = []
    tkeys = jax.random.split(k3, 2 * len(sizes))
    for i, n in enumerate(sizes):
        c = jax.random.uniform(tkeys[2 * i], (n, 2), minval=0.2, maxval=0.8)
        wh = jax.random.uniform(tkeys[2 * i + 1], (n, 2), minval=0.05, maxval=0.3)
        targets.append(np.asarray(jnp.concatenate([c, wh], axis=-1), np.float32))

    loss = detr_loc_loss(preds, targets)
    loss = jax.block_until_ready(loss)

    ref = _reference_loss(np.asarray(preds, np.float32), targets)
    assert np.isfinite(float(loss))
    assert abs(float(loss) - float(ref)) < 1e-4, (float(loss), float(ref))
    print("KERNEL_OK")
</pallas_src>

<mosaic_0001>
module attributes {stable_mosaic.version = 11 : i64} {
  func.func @_l1_cost_kernel(%arg0: i32, %arg1: i32, %arg2: memref<16x4xf32, #tpu.memory_space<vmem>>, %arg3: memref<4x128xf32, #tpu.memory_space<vmem>>, %arg4: memref<16x128xf32, #tpu.memory_space<vmem>>) attributes {dimension_semantics = [#tpu.dimension_semantics<parallel>, #tpu.dimension_semantics<parallel>], iteration_bounds = array<i64: 1, 1>, scalar_prefetch = 0 : i64, scratch_operands = 0 : i64, tpu.core_type = #tpu.core_type<tc>, window_params = [{transform_indices = @transform_0, window_bounds = array<i64: 16, 4>}, {transform_indices = @transform_1, window_bounds = array<i64: 4, 128>}, {transform_indices = @transform_2, window_bounds = array<i64: 16, 128>}]} {
    %c0 = arith.constant 0 : index
    %c0_0 = arith.constant 0 : index
    %0 = vector.load %arg2[%c0, %c0_0] : memref<16x4xf32, #tpu.memory_space<vmem>>, vector<16x1xf32>
    %c0_1 = arith.constant 0 : index
    %c1 = arith.constant 1 : index
    %1 = vector.load %arg2[%c0_1, %c1] : memref<16x4xf32, #tpu.memory_space<vmem>>, vector<16x1xf32>
    %c0_2 = arith.constant 0 : index
    %c2 = arith.constant 2 : index
    %2 = vector.load %arg2[%c0_2, %c2] : memref<16x4xf32, #tpu.memory_space<vmem>>, vector<16x1xf32>
    %c0_3 = arith.constant 0 : index
    %c3 = arith.constant 3 : index
    %3 = vector.load %arg2[%c0_3, %c3] : memref<16x4xf32, #tpu.memory_space<vmem>>, vector<16x1xf32>
    %c0_4 = arith.constant 0 : index
    %c0_5 = arith.constant 0 : index
    %4 = vector.load %arg3[%c0_4, %c0_5] : memref<4x128xf32, #tpu.memory_space<vmem>>, vector<1x128xf32>
    %c1_6 = arith.constant 1 : index
    %c0_7 = arith.constant 0 : index
    %5 = vector.load %arg3[%c1_6, %c0_7] : memref<4x128xf32, #tpu.memory_space<vmem>>, vector<1x128xf32>
    %c2_8 = arith.constant 2 : index
    %c0_9 = arith.constant 0 : index
    %6 = vector.load %arg3[%c2_8, %c0_9] : memref<4x128xf32, #tpu.memory_space<vmem>>, vector<1x128xf32>
    %c3_10 = arith.constant 3 : index
    %c0_11 = arith.constant 0 : index
    %7 = vector.load %arg3[%c3_10, %c0_11] : memref<4x128xf32, #tpu.memory_space<vmem>>, vector<1x128xf32>
    %8 = vector.broadcast %0 : vector<16x1xf32> to vector<16x128xf32>
    %9 = vector.broadcast %4 : vector<1x128xf32> to vector<16x128xf32>
    %10 = arith.subf %8, %9 : vector<16x128xf32>
    %11 = math.absf %10 : vector<16x128xf32>
    %12 = vector.broadcast %1 : vector<16x1xf32> to vector<16x128xf32>
    %13 = vector.broadcast %5 : vector<1x128xf32> to vector<16x128xf32>
    %14 = arith.subf %12, %13 : vector<16x128xf32>
    %15 = math.absf %14 : vector<16x128xf32>
    %16 = arith.addf %11, %15 : vector<16x128xf32>
    %17 = vector.broadcast %2 : vector<16x1xf32> to vector<16x128xf32>
    %18 = vector.broadcast %6 : vector<1x128xf32> to vector<16x128xf32>
    %19 = arith.subf %17, %18 : vector<16x128xf32>
    %20 = math.absf %19 : vector<16x128xf32>
    %21 = arith.addf %16, %20 : vector<16x128xf32>
    %22 = vector.broadcast %3 : vector<16x1xf32> to vector<16x128xf32>
    %23 = vector.broadcast %7 : vector<1x128xf32> to vector<16x128xf32>
    %24 = arith.subf %22, %23 : vector<16x128xf32>
    %25 = math.absf %24 : vector<16x128xf32>
    %26 = arith.addf %21, %25 : vector<16x128xf32>
    %c0_12 = arith.constant 0 : index
    %c0_13 = arith.constant 0 : index
    %27 = vector.load %arg4[%c0_12, %c0_13] : memref<16x128xf32, #tpu.memory_space<vmem>>, vector<16x128xf32>
    tpu.vector_store %arg4[%c0_12, %c0_13], %26 {strides = array<i32>} : memref<16x128xf32, #tpu.memory_space<vmem>>, vector<16x128xf32>,
    return
  }
  func.func @transform_0(%arg0: i32, %arg1: i32) -> (i32, i32) {
    %c0_i32 = arith.constant 0 : i32
    %c0_i32_0 = arith.constant 0 : i32
    return %arg0, %c0_i32 : i32, i32
  }
  func.func @transform_1(%arg0: i32, %arg1: i32) -> (i32, i32) {
    %c0_i32 = arith.constant 0 : i32
    %c0_i32_0 = arith.constant 0 : i32
    return %c0_i32, %arg1 : i32, i32
  }
  func.func @transform_2(%arg0: i32, %arg1: i32) -> (i32, i32) {
    %c0_i32 = arith.constant 0 : i32
    return %arg0, %arg1 : i32, i32
  }
}

</mosaic_0001>

<bundles_post_ra>
// kernel: pairwise_l1_cost_padded.1
= control target key start
LH: loop header
LB: loop body
LE: loop exit
PB: predicated region body
PF: predicated region fallthrough
CT: control target
= control target key end

     0   :  { %v147_v1 = vmov 1   ;;  %v148_v2 = vmov 0   ;;  %s190_s0 = inlined_call_operand.vmem [shape: f32[16,4], index: 0, kind: input, shape index: {}]   ;;  %s191_s1 = inlined_call_operand.vmem [shape: f32[4,128], index: 1, kind: input, shape index: {}]   ;;  %s192_s2 = inlined_call_operand.hbm [shape: f32[16,128], index: 2, kind: output, shape index: {}]  }
   0x1   :  { %v12_v0 = vld [vmem:[%s190_s0] sm:$0xff]  ;;  %120 = vset.pattern.permute.xlu1 %v147_v1  ;;  %119 = vset.pattern.permute.xlu0 %v148_v2 }
   0x2   :  { %7 = vsyncpa [#allocation3], 0  ;;  %37 = vperm.xlu1 %120, %v12_v0   ;;  %20 = vperm.xlu0 %119, %v12_v0   ;;  %v13_v3 = vld [vmem:[%s190_s0 + $0x8] sm:$0xff]  ;;  %v149_v4 = vmov 2   ;;  %v150_v5 = vmov 3   ;;  %s151_s20 = smov [#allocation2]  }
   0x3   :  { %v109_v8 = vld [vmem:[%s191_s1 + $0x1] ss:$0 sm:$0xff]  ;;  %v108_v9 = vld [vmem:[%s191_s1] ss:$0 sm:$0xff]  ;;  %v110_v16 = vld [vmem:[%s191_s1 + $0x2] ss:$0 sm:$0xff] }
   0x4   :  { %v111_v25 = vld [vmem:[%s191_s1 + $0x3] ss:$0 sm:$0xff]  ;;  %s97_s21 = sshll.u32 %s151_s20, 4  ;;  %s98_s21 = int_to_ptr.vmem [resolvable:$true] %s97_s21 }
   0x5   :  { %s125_s1 = scalar_lea.vmem %s98_s21, 256  ;;  %p130_p1 = scmp.lt.s32.totalorder %s98_s21, %s98_s21 }
   0x6   :  { %41 = vperm.xlu1 %120, %v13_v3   ;;  %25 = vperm.xlu0 %119, %v13_v3   ;;  %p126_p0 = scmp.ne.s32.totalorder %s98_s21, %s125_s1  ;;  %p131_p2 = scmp.lt.s32.totalorder %s125_s1, %s125_s1 }
   0x8   :  { %p132_p3 = por %p131_p2, %p130_p1 }
   0xa   :  { %122 = vset.pattern.permute.xlu1 %v149_v4  ;;  %121 = vset.pattern.permute.xlu0 %v149_v4  ;;  %p133_p4 = pnand %p132_p3, %p126_p0 }
   0xb   :  { %59 = vperm.xlu1 %122, %v13_v3   ;;  %55 = vperm.xlu0 %121, %v12_v0  }
   0xf   :  { %123 = vset.pattern.permute.xlu1 %v150_v5  ;;  %124 = vset.pattern.permute.xlu0 %v150_v5 }
  0x10   :  { %73 = vperm.xlu1 %123, %v12_v0   ;;  %77 = vperm.xlu0 %124, %v13_v3  }
  0x7d   :  { %v38_v6 = vpop.permute.xlu1 %37  ;;  %v21_v7 = vpop.permute.xlu0 %20 }
  0x7e   :  { %v48_v12 = vsub.f32 %v38_v6, %v109_v8  ;;  %v32_v13 = vsub.f32 %v21_v7, %v108_v9 }
  0x80   :  { %v50_v19 = vand.u32 2147483647, %v48_v12  ;;  %v34_v22 = vand.u32 2147483647, %v32_v13 }
  0x81   :  { %v42_v10 = vpop.permute.xlu1 %41  ;;  %v26_v11 = vpop.permute.xlu0 %25 }
  0x82   :  { %v49_v14 = vsub.f32 %v42_v10, %v109_v8  ;;  %v33_v15 = vsub.f32 %v26_v11, %v108_v9  ;;  %v52_v30 = vadd.f32 %v50_v19, %v34_v22 }
  0x84   :  { %v51_v23 = vand.u32 2147483647, %v49_v14  ;;  %v35_v24 = vand.u32 2147483647, %v33_v15 }
  0x86   :  { %v60_v17 = vpop.permute.xlu1 %59  ;;  %v56_v18 = vpop.permute.xlu0 %55  ;;  %v53_v31 = vadd.f32 %v51_v23, %v35_v24 }
  0x87   :  { %v67_v20 = vsub.f32 %v60_v17, %v110_v16  ;;  %v66_v21 = vsub.f32 %v56_v18, %v110_v16 }
  0x89   :  { %v69_v26 = vand.u32 2147483647, %v67_v20  ;;  %v68_v27 = vand.u32 2147483647, %v66_v21 }
  0x8b   :  { %v74_v28 = vpop.permute.xlu1 %73  ;;  %v78_v29 = vpop.permute.xlu0 %77  ;;  %v71_v34 = vadd.f32 %v69_v26, %v53_v31  ;;  %v70_v35 = vadd.f32 %v68_v27, %v52_v30 }
  0x8c   :  { %v84_v32 = vsub.f32 %v74_v28, %v111_v25  ;;  %v85_v33 = vsub.f32 %v78_v29, %v111_v25 }
  0x8e   :  { %v86_v36 = vand.u32 2147483647, %v84_v32  ;;  %v87_v37 = vand.u32 2147483647, %v85_v33 }
  0x90   :  { %v88_v38 = vadd.f32 %v86_v36, %v70_v35  ;;  %v89_v39 = vadd.f32 %v87_v37, %v71_v34 }
  0x92   :  { %90 = vst [vmem:[#allocation2] sm:$0xff] %v88_v38  ;;  %91 = vst [vmem:[#allocation2 + $0x8] sm:$0xff] %v89_v39 }
  0x93   :  { %136 = shalt.err (!%p133_p4)
}
  0x94   :  { %s152_s22 = smov 128   ;;  %s153_s23 = smov 8  }
  0x95   :  { %103 = dma.vmem_to_hbm [thread:$0]  %s98_s21, 256, %s192_s2, [#allocation3], %s152_s22, %s152_s22, %s153_s23  }
  0x96   :  { %145 = dma.done.wait [#allocation3], 256  }
  0x97   :  { %146 = vsyncadd [#allocation3], 4294967040 }
  0x98   :  { %107 = vsyncpa [#allocation3], 1 }

</bundles_post_ra>
